<compile_context>
chip_gen: v5e
topology: v5e:2x2
jax: 0.10.0
libtpu: 0.0.40
codegen_flags: <defaults>
</compile_context>

<pallas_src>
import functools

import jax
import jax.numpy as jnp
from jax.experimental import pallas as pl
from jax.experimental.pallas import tpu as pltpu


def make_position_encoding_table(max_len: int, d_model: int, dtype=jnp.float32):
    """pe[pos, 2i] = sin(pos / 10000^(2i/d)), pe[pos, 2i+1] = cos(pos / 10000^(2i/d))."""
    pos = jnp.arange(max_len, dtype=jnp.float32)[:, None]                    # (max_len, 1)
    denom = jnp.power(
        10000.0, jnp.arange(0, d_model, 2, dtype=jnp.float32) / d_model)     # (d_model/2,)
    pe = jnp.zeros((max_len, d_model), dtype=jnp.float32)
    pe = pe.at[:, 0::2].set(jnp.sin(pos / denom))
    pe = pe.at[:, 1::2].set(jnp.cos(pos / denom))
    return pe.astype(dtype)


def _add_pe_kernel(x_ref, pe_ref, o_ref):
    # x_ref: (tb, tc); pe_ref: (1, tc) broadcast over the batch rows.
    # Arithmetic in f32 (no-op for f32 inputs, avoids bf16 VALU penalties on v5e).
    y = x_ref[...].astype(jnp.float32) + pe_ref[...].astype(jnp.float32)
    o_ref[...] = y.astype(o_ref.dtype)


def _add_pe_dropout_kernel(x_ref, pe_ref, rnd_ref, o_ref, *, threshold, scale):
    y = x_ref[...].astype(jnp.float32) + pe_ref[...].astype(jnp.float32)
    keep = rnd_ref[...] >= threshold                 # rnd uniform in [0, 2^31): P(keep) = 1 - p
    o_ref[...] = jnp.where(keep, y * scale, 0.0).astype(o_ref.dtype)


def position_encoding(x, pe, *, dropout_p=0.1, training=False, rng_key=None,
                      block_rows=None, block_cols=None):
    """x: (B, S, D) float array.  pe: (max_len, D) table with max_len >= S."""
    B, S, D = x.shape
    assert pe.shape[1] == D and pe.shape[0] >= S
    SD = S * D

    # torch.nn.Dropout(p >= 1) zeroes everything in training mode.
    if training and dropout_p >= 1.0:
        return jnp.zeros_like(x)

    # Lane-dense 2-D view: last dim is S*D so stores are full-lane (unmasked) vst.
    x2 = x.reshape(B, SD)
    pe2 = pe[:S].astype(x.dtype).reshape(1, SD)      # pre-cast once: halves pe DMA for bf16

    itemsize = jnp.dtype(x.dtype).itemsize
    if block_rows is None:
        block_rows = B if B <= 8 else 8              # == full dim, or a multiple of 8
    if block_cols is None:
        target_bytes = 4 << 20                       # ~4 MiB x-tile per grid step
        cols = max(128, (target_bytes // (block_rows * itemsize)) // 128 * 128)
        block_cols = SD if cols >= SD else cols      # == full dim, or a multiple of 128

    n_col_tiles = pl.cdiv(SD, block_cols)
    n_row_tiles = pl.cdiv(B, block_rows)

    # Batch axis innermost: the pe block index depends only on the column tile,
    # so Pallas keeps the pe block resident instead of re-DMAing it per batch.
    x_spec = pl.BlockSpec((block_rows, block_cols), lambda c, r: (r, c))
    pe_spec = pl.BlockSpec((1, block_cols), lambda c, r: (0, c))
    out_spec = pl.BlockSpec((block_rows, block_cols), lambda c, r: (r, c))

    compiler_params = pltpu.CompilerParams(
        dimension_semantics=("parallel", "parallel"),
        vmem_limit_bytes=48 << 20,
    )

    if training and dropout_p > 0.0:
        if rng_key is None:
            rng_key = jax.random.PRNGKey(0)
        # TODO(synk): RNG stream differs from torch.nn.Dropout (mask values won't
        # match PyTorch bit-for-bit); keep-prob (1-p) and 1/(1-p) scaling do.
        bits = jax.random.bits(rng_key, (B, SD), dtype=jnp.uint32)
        rnd = (bits >> jnp.uint32(1)).astype(jnp.int32)          # uniform in [0, 2^31)
        threshold = min(int(round(dropout_p * float(2 ** 31))), 2 ** 31 - 1)
        scale = 1.0 / (1.0 - dropout_p)
        kernel = functools.partial(
            _add_pe_dropout_kernel, threshold=threshold, scale=scale)
        in_specs = [x_spec, pe_spec,
                    pl.BlockSpec((block_rows, block_cols), lambda c, r: (r, c))]
        operands = (x2, pe2, rnd)
    else:
        kernel = _add_pe_kernel
        in_specs = [x_spec, pe_spec]
        operands = (x2, pe2)

    out2 = pl.pallas_call(
        kernel,
        out_shape=jax.ShapeDtypeStruct((B, SD), x.dtype),
        grid=(n_col_tiles, n_row_tiles),
        in_specs=in_specs,
        out_specs=out_spec,
        compiler_params=compiler_params,
    )(*operands)

    return out2.reshape(B, S, D)


if __name__ == "__main__":
    B, S, D, MAX_LEN = 2, 8, 32, 1024
    DROPOUT_P = 0.1

    key = jax.random.PRNGKey(0)
    x = jax.random.normal(key, (B, S, D), dtype=jnp.float32)
    pe = make_position_encoding_table(MAX_LEN, D, dtype=jnp.float32)

    # Eval mode: dropout is identity -> must equal x + pe[:, :S].
    out = jax.block_until_ready(
        position_encoding(x, pe, dropout_p=DROPOUT_P, training=False))
    ref = x + pe[None, :S, :]
    assert out.shape == (B, S, D) and out.dtype == x.dtype
    assert jnp.allclose(out, ref, atol=1e-6, rtol=1e-6)

    # Training mode: every surviving element equals (x + pe) / (1 - p).
    out_train = jax.block_until_ready(
        position_encoding(x, pe, dropout_p=DROPOUT_P, training=True,
                          rng_key=jax.random.PRNGKey(42)))
    assert out_train.shape == (B, S, D) and out_train.dtype == x.dtype
    kept = out_train != 0.0
    assert jnp.allclose(jnp.where(kept, out_train, 0.0),
                        jnp.where(kept, ref / (1.0 - DROPOUT_P), 0.0),
                        atol=1e-5, rtol=1e-5)
    keep_frac = float(jnp.mean(kept.astype(jnp.float32)))
    assert 0.7 <= keep_frac <= 1.0

    print("KERNEL_OK")
</pallas_src>

<mosaic_0001>
module attributes {stable_mosaic.version = 11 : i64} {
  func.func @_add_pe_kernel(%arg0: i32, %arg1: i32, %arg2: memref<2x256xf32, #tpu.memory_space<vmem>>, %arg3: memref<1x256xf32, #tpu.memory_space<vmem>>, %arg4: memref<2x256xf32, #tpu.memory_space<vmem>>) attributes {dimension_semantics = [#tpu.dimension_semantics<parallel>, #tpu.dimension_semantics<parallel>], iteration_bounds = array<i64: 1, 1>, scalar_prefetch = 0 : i64, scratch_operands = 0 : i64, tpu.core_type = #tpu.core_type<tc>, window_params = [{transform_indices = @transform_0, window_bounds = array<i64: 2, 256>}, {transform_indices = @transform_1, window_bounds = array<i64: 1, 256>}, {transform_indices = @transform_2, window_bounds = array<i64: 2, 256>}]} {
    %c0 = arith.constant 0 : index
    %c0_0 = arith.constant 0 : index
    %0 = vector.load %arg2[%c0, %c0_0] : memref<2x256xf32, #tpu.memory_space<vmem>>, vector<2x256xf32>
    %c0_1 = arith.constant 0 : index
    %c0_2 = arith.constant 0 : index
    %1 = vector.load %arg3[%c0_1, %c0_2] : memref<1x256xf32, #tpu.memory_space<vmem>>, vector<1x256xf32>
    %2 = vector.broadcast %1 : vector<1x256xf32> to vector<2x256xf32>
    %3 = arith.addf %0, %2 : vector<2x256xf32>
    %c0_3 = arith.constant 0 : index
    %c0_4 = arith.constant 0 : index
    %4 = vector.load %arg4[%c0_3, %c0_4] : memref<2x256xf32, #tpu.memory_space<vmem>>, vector<2x256xf32>
    tpu.vector_store %arg4[%c0_3, %c0_4], %3 {strides = array<i32>} : memref<2x256xf32, #tpu.memory_space<vmem>>, vector<2x256xf32>,
    return
  }
  func.func @transform_0(%arg0: i32, %arg1: i32) -> (i32, i32) {
    %c0_i32 = arith.constant 0 : i32
    return %arg1, %arg0 : i32, i32
  }
  func.func @transform_1(%arg0: i32, %arg1: i32) -> (i32, i32) {
    %c0_i32 = arith.constant 0 : i32
    %c0_i32_0 = arith.constant 0 : i32
    return %c0_i32, %arg0 : i32, i32
  }
  func.func @transform_2(%arg0: i32, %arg1: i32) -> (i32, i32) {
    %c0_i32 = arith.constant 0 : i32
    return %arg1, %arg0 : i32, i32
  }
}

</mosaic_0001>

<bundles_post_ra>
// kernel: tpu_custom_call.1
= control target key start
LH: loop header
LB: loop body
LE: loop exit
PB: predicated region body
PF: predicated region fallthrough
CT: control target
= control target key end

     0   :  { %7 = vsyncpa [#allocation3], 0  ;;  %s177_s0 = inlined_call_operand.hbm [shape: f32[2,256], index: 0, kind: input, shape index: {}]   ;;  %s178_s1 = inlined_call_operand.hbm [shape: f32[1,256], index: 1, kind: input, shape index: {}]   ;;  %s179_s2 = inlined_call_operand.hbm [shape: f32[2,256], index: 2, kind: output, shape index: {}]  }
   0x1   :  { %8 = vsyncpa [#allocation6], 0 }
   0x2   :  { %9 = vsyncpa [#allocation4], 0  ;;  %s15_s11 = sshll.u32 %s177_s0, 4  ;;  %s150_s12 = smov [#allocation2]   ;;  %s16_s11 = int_to_ptr.hbm [resolvable:$true] %s15_s11 }
   0x3   :  { %s17_s13 = sshll.u32 %s150_s12, 4  ;;  %s26_s16 = sshll.u32 %s178_s1, 4  ;;  %s18_s13 = int_to_ptr.vmem [resolvable:$true] %s17_s13  ;;  %s27_s16 = int_to_ptr.hbm [resolvable:$true] %s26_s16 }
   0x4   :  { %20 = dma.hbm_to_vmem [thread:$0]  %s16_s11, 64, %s18_s13, [#allocation3]  }
   0x5   :  { %s151_s17 = smov [#allocation5]  }
   0x6   :  { %s28_s18 = sshll.u32 %s151_s17, 4  ;;  %s29_s18 = int_to_ptr.vmem [resolvable:$true] %s28_s18 }
   0x7   :  { %31 = dma.hbm_to_vmem [thread:$0]  %s27_s16, 32, %s29_s18, [#allocation6]  }
   0x8   :  { %144 = dma.done.wait [#allocation3], 64  }
   0x9   :  { %145 = vsyncadd [#allocation3], 4294967232 }
   0xa   :  { %146 = dma.done.wait [#allocation6], 32  }
   0xb   :  { %147 = vsyncadd [#allocation6], 4294967264  ;;  %v41_v0 = vld [vmem:[#allocation5] sm:$0x3]  ;;  %vm46_vm0 = vcmask 1041408   ;;  %s152_s0 = smov [#allocation7]  }
   0xc   :  { %v43_v1 = vperm.slane %v41_v0, 0  ;;  %v44_v2 = vperm.slane %v41_v0, 1  ;;  %v40_v3 = vld [vmem:[#allocation2] sm:$0xf]  ;;  %s56_s19 = sshll.u32 %s152_s0, 4  ;;  %s58_s21 = sshll.u32 %s179_s2, 4  ;;  %s57_s19 = int_to_ptr.vmem [resolvable:$true] %s56_s19  ;;  %s59_s21 = int_to_ptr.hbm [resolvable:$true] %s58_s21 }
   0xe   :  { %v45_v4 = vrot.slane %v44_v2, 6 }
  0x10   :  { %v47_v5 = vsel %vm46_vm0, %v43_v1, %v45_v4 }
  0x11   :  { %v49_v6 = vadd.f32 %v47_v5, %v40_v3 }
  0x13   :  { %50 = vst [vmem:[#allocation7] sm:$0xf] %v49_v6 }
  0x14   :  { %61 = dma.vmem_to_hbm [thread:$0]  %s57_s19, 64, %s59_s21, [#allocation4]  }
  0x15   :  { %148 = dma.done.wait [#allocation4], 64  }
  0x16   :  { %149 = vsyncadd [#allocation4], 4294967232 }
  0x17   :  { %66 = vsyncpa [#allocation3], 1 }
  0x18   :  { %67 = vsyncpa [#allocation6], 1 }
  0x19   :  { %68 = vsyncpa [#allocation4], 1 }

</bundles_post_ra>
